<compile_context>
chip_gen: v7x
topology: tpu7x:2x2x1
jax: 0.10.0
libtpu: 0.0.40
codegen_flags: <defaults>
</compile_context>

<pallas_src>
import functools

import jax
import jax.numpy as jnp
from jax.experimental import pallas as pl
from jax.experimental.pallas import tpu as pltpu

BN_EPS = 1e-5
LANE = 128
SUBLANE = 8


def _round_up(x, m):
    return (x + m - 1) // m * m


def _vmem_budget_bytes():
    # Generation-aware scoped-VMEM budget: v5e/v6e have 128 MiB VMEM, v7x only
    # 64 MiB per TensorCore.  Use ~75% of capacity, leaving headroom for Mosaic
    # internal scratch.  Conservative fallback = v7x per-core size.
    cap = 64 << 20
    try:
        cap = int(pltpu.get_tpu_info().vmem_capacity_bytes)
    except Exception:
        pass
    return (cap * 3) // 4


# ----------------------------------------------------------------------------
# One-time parameter preparation (hoist out of the serving loop).
# ----------------------------------------------------------------------------
def fold_bn_into_linear(w, b, gamma, beta, running_mean, running_var,
                        *, eps=BN_EPS, matmul_dtype=None):
    """Fold eval-mode BatchNorm1d into the Linear layer.

    w: [OUT, IN] (PyTorch nn.Linear layout); others: [OUT].
    Returns (w_fused [IN, OUT_padded], b_fused [1, OUT_padded] f32) with OUT padded
    to a multiple of 128 lanes (zero columns -> ReLU(0)=0, sliced off later).
    Optionally pre-casts the weight to `matmul_dtype` (e.g. bf16 MXU inputs).
    """
    scale = gamma * jax.lax.rsqrt(running_var + eps)          # [OUT]
    w_fused = jnp.transpose(w) * scale[None, :]               # [IN, OUT]
    b_fused = (b - running_mean) * scale + beta               # [OUT]

    out = w.shape[0]
    out_p = _round_up(out, LANE)
    if out_p != out:
        w_fused = jnp.pad(w_fused, ((0, 0), (0, out_p - out)))
        b_fused = jnp.pad(b_fused, (0, out_p - out))
    if matmul_dtype is not None:
        w_fused = w_fused.astype(matmul_dtype)
    b_fused = b_fused.reshape(1, out_p).astype(jnp.float32)
    return w_fused, b_fused


# ----------------------------------------------------------------------------
# Kernels
# ----------------------------------------------------------------------------
def unit_kernel_single_k(x_ref, w_ref, b_ref, o_ref):
    # Whole reduction in one step: matmul + bias + ReLU (Dropout = identity, eval).
    x = x_ref[...].astype(w_ref.dtype)        # in-kernel matmul-dtype cast (VPU, free)
    y = jnp.dot(x, w_ref[...], preferred_element_type=jnp.float32)
    y = jnp.maximum(y + b_ref[...], 0.0)      # BN already folded into bias
    o_ref[...] = y.astype(o_ref.dtype)


def unit_kernel_ktiled(x_ref, w_ref, b_ref, o_ref, acc_ref):
    # K-tiled reduction with f32 VMEM accumulator; bias+ReLU+store on the last K step.
    k = pl.program_id(2)
    x = x_ref[...].astype(w_ref.dtype)
    part = jnp.dot(x, w_ref[...], preferred_element_type=jnp.float32)

    @pl.when(k == 0)
    def _init():
        acc_ref[...] = part

    @pl.when(k > 0)
    def _accum():
        acc_ref[...] += part

    @pl.when(k == pl.num_programs(2) - 1)
    def _finish():
        y = jnp.maximum(acc_ref[...] + b_ref[...], 0.0)
        o_ref[...] = y.astype(o_ref.dtype)


# ----------------------------------------------------------------------------
# Tile selection
# ----------------------------------------------------------------------------
def _select_tiles(B, IN, out_p, *, w_item, out_item, budget):
    """Pick (tile_b, tile_n, tile_k) so the double-buffered working set fits VMEM."""

    def footprint(tb, tn, tk):
        return (2 * tb * tk * 4            # x tile (f32 in VMEM; cast in-kernel), 2-buf
                + 2 * tk * tn * w_item     # fused-weight tile, 2-buf
                + 2 * tb * tn * out_item   # output tile, 2-buf
                + tb * tn * 4              # f32 accumulator scratch (K-tiled path)
                + 2 * tn * 4               # bias tile
                + (2 << 20))               # Mosaic internal scratch headroom

    # Row tile: one big tile for small/medium batches (fewer grid steps on the
    # single-TC v5e/v6e); 512-row tiles for big batches so v7x's 2 TCs share rows.
    if B <= 1024:
        b_full = min(_round_up(B, SUBLANE), 1024)
    else:
        b_full = 512
    b_candidates = []
    for tb in (b_full, 512, 256, 128, 64, 32, 16, SUBLANE):
        if tb <= b_full and tb not in b_candidates:
            b_candidates.append(tb)

    # OUT tile: whole padded OUT when small (lane-dense, resident), else 512/256/128.
    n_candidates = [out_p] if out_p <= 512 else [512, 256, 128]

    # K tile: whole IN when it fits; otherwise the largest multiple of 128 that
    # divides IN (keeps every reduction block fully in-bounds).
    k_candidates = [IN] + [k for k in (2048, 1024, 512, 256, 128)
                           if k < IN and IN % k == 0]

    for tb in b_candidates:            # shrink K first, then N, then B
        for tn in n_candidates:
            for tk in k_candidates:
                if footprint(tb, tn, tk) <= budget:
                    return tb, tn, tk
    return SUBLANE, n_candidates[-1], k_candidates[-1]   # last resort


# ----------------------------------------------------------------------------
# Forward pass (pre-folded parameters)
# ----------------------------------------------------------------------------
def unit_forward_folded(x, w_fused, b_fused, *, out_features=None, out_dtype=None,
                        tile_b=None, tile_n=None, tile_k=None):
    """Eval-mode Unit forward with pre-folded (BN-into-Linear) parameters.

    x: [B, IN] float32.  w_fused: [IN, OUT_padded].  b_fused: [1, OUT_padded] f32.
    """
    B, IN = x.shape
    in_w, out_p = w_fused.shape
    assert in_w == IN, "w_fused must have shape (IN, OUT_padded)"
    assert out_p % LANE == 0, "w_fused OUT dim must be lane-padded (see fold_bn_into_linear)"
    out_features = out_p if out_features is None else out_features
    out_dtype = x.dtype if out_dtype is None else out_dtype

    budget = _vmem_budget_bytes()
    sel_tb, sel_tn, sel_tk = _select_tiles(
        B, IN, out_p,
        w_item=jnp.dtype(w_fused.dtype).itemsize,
        out_item=jnp.dtype(out_dtype).itemsize,
        budget=budget)
    tile_b = sel_tb if tile_b is None else tile_b
    tile_n = sel_tn if tile_n is None else tile_n
    tile_k = sel_tk if tile_k is None else tile_k

    n_i = pl.cdiv(B, tile_b)       # partial last row tile handled by Pallas (no x pad)
    n_j = pl.cdiv(out_p, tile_n)
    n_k = pl.cdiv(IN, tile_k)

    if n_k == 1:
        kernel = unit_kernel_single_k
        scratch_shapes = []
    else:
        kernel = unit_kernel_ktiled
        scratch_shapes = [pltpu.VMEM((tile_b, tile_n), jnp.float32)]

    flops = 2 * B * IN * out_p
    bytes_accessed = (x.size * jnp.dtype(x.dtype).itemsize
                      + w_fused.size * jnp.dtype(w_fused.dtype).itemsize
                      + b_fused.size * jnp.dtype(b_fused.dtype).itemsize
                      + B * out_p * jnp.dtype(out_dtype).itemsize)

    out = pl.pallas_call(
        kernel,
        out_shape=jax.ShapeDtypeStruct((B, out_p), out_dtype),
        grid_spec=pltpu.PrefetchScalarGridSpec(
            num_scalar_prefetch=0,
            grid=(n_i, n_j, n_k),
            in_specs=[
                pl.BlockSpec((tile_b, tile_k), lambda i, j, k: (i, k)),   # x tile
                pl.BlockSpec((tile_k, tile_n), lambda i, j, k: (k, j)),   # fused weight
                pl.BlockSpec((1, tile_n), lambda i, j, k: (0, j)),        # fused bias
            ],
            out_specs=pl.BlockSpec((tile_b, tile_n), lambda i, j, k: (i, j)),
            scratch_shapes=scratch_shapes,
        ),
        compiler_params=pltpu.CompilerParams(
            dimension_semantics=("parallel", "parallel", "arbitrary"),
            vmem_limit_bytes=int(budget),
        ),
        cost_estimate=pl.CostEstimate(flops=int(flops), transcendentals=0,
                                      bytes_accessed=int(bytes_accessed)),
    )(x, w_fused, b_fused)

    if out_features != out_p:
        out = out[:, :out_features]   # strip lane padding
    return out


def unit_forward(x, w, b, gamma, beta, running_mean, running_var, *,
                 eps=BN_EPS, matmul_dtype=None, out_dtype=None):
    """Convenience one-shot wrapper.  In a serving loop, call fold_bn_into_linear()
    once and reuse its outputs with unit_forward_folded()."""
    w_fused, b_fused = fold_bn_into_linear(
        w, b, gamma, beta, running_mean, running_var,
        eps=eps, matmul_dtype=matmul_dtype)
    return unit_forward_folded(x, w_fused, b_fused,
                               out_features=w.shape[0], out_dtype=out_dtype)


if __name__ == "__main__":
    # Unit(in_features=32, out_features=64, dropout=0.5, act_fn="ReLU"), eval mode.
    B, IN, OUT = 8, 32, 64

    key = jax.random.PRNGKey(0)
    kx, kw, kb, km, kv, kg, kbe = jax.random.split(key, 7)

    x = jax.random.normal(kx, (B, IN), dtype=jnp.float32)

    # PyTorch-style Linear init: uniform(-1/sqrt(IN), 1/sqrt(IN)).
    bound = 1.0 / (IN ** 0.5)
    w = jax.random.uniform(kw, (OUT, IN), minval=-bound, maxval=bound, dtype=jnp.float32)
    b = jax.random.uniform(kb, (OUT,), minval=-bound, maxval=bound, dtype=jnp.float32)

    # Non-trivial BatchNorm1d parameters / running statistics.
    running_mean = 0.1 * jax.random.normal(km, (OUT,), dtype=jnp.float32)
    running_var = jax.random.uniform(kv, (OUT,), minval=0.5, maxval=1.5, dtype=jnp.float32)
    gamma = jax.random.uniform(kg, (OUT,), minval=0.5, maxval=1.5, dtype=jnp.float32)
    beta = 0.1 * jax.random.normal(kbe, (OUT,), dtype=jnp.float32)

    # Pure-JAX reference (eval mode: dropout is identity).
    lin = x @ w.T + b
    ref = (lin - running_mean) * jax.lax.rsqrt(running_var + BN_EPS) * gamma + beta
    ref = jnp.maximum(ref, 0.0)

    # --- f32 path: one-time BN fold / transpose / lane-pad, then the fused kernel. ---
    w_f32, bias_f32 = fold_bn_into_linear(w, b, gamma, beta, running_mean, running_var)
    out_f32 = jax.block_until_ready(
        unit_forward_folded(x, w_f32, bias_f32, out_features=OUT))
    assert out_f32.shape == (B, OUT)
    assert jnp.allclose(out_f32, ref, atol=1e-4, rtol=1e-4), "f32 kernel mismatch"

    # --- bf16 matmul-input fast path (valid on v5e/v6e/v7x): weight pre-cast once,
    #     activations cast in-kernel, f32 accumulation, f32 output for comparison. ---
    w_bf16, bias_bf16 = fold_bn_into_linear(w, b, gamma, beta, running_mean,
                                            running_var, matmul_dtype=jnp.bfloat16)
    out_bf16 = jax.block_until_ready(
        unit_forward_folded(x, w_bf16, bias_bf16, out_features=OUT))
    assert out_bf16.shape == (B, OUT)
    assert jnp.allclose(out_bf16, ref, atol=5e-2, rtol=5e-2), "bf16 kernel mismatch"

    # --- Ragged batch: no host-side padding of x; the partial last row tile is
    #     handled by Pallas (out-of-bounds rows are never written). ---
    out_ragged = jax.block_until_ready(
        unit_forward_folded(x[:6], w_f32, bias_f32, out_features=OUT))
    assert out_ragged.shape == (6, OUT)
    assert jnp.allclose(out_ragged, ref[:6], atol=1e-4, rtol=1e-4), "ragged batch mismatch"

    # Convenience one-shot API (prep + kernel in one call).
    out_once = jax.block_until_ready(
        unit_forward(x, w, b, gamma, beta, running_mean, running_var))
    assert jnp.allclose(out_once, ref, atol=1e-4, rtol=1e-4), "one-shot wrapper mismatch"

    print("KERNEL_OK")
</pallas_src>

<mosaic_0001>
module attributes {stable_mosaic.version = 11 : i64} {
  func.func @unit_kernel_single_k(%arg0: i32, %arg1: i32, %arg2: i32, %arg3: memref<8x32xf32, #tpu.memory_space<vmem>>, %arg4: memref<32x128xf32, #tpu.memory_space<vmem>>, %arg5: memref<1x128xf32, #tpu.memory_space<vmem>>, %arg6: memref<8x128xf32, #tpu.memory_space<vmem>>) attributes {dimension_semantics = [#tpu.dimension_semantics<parallel>, #tpu.dimension_semantics<parallel>, #tpu.dimension_semantics<arbitrary>], iteration_bounds = array<i64: 1, 1, 1>, scalar_prefetch = 0 : i64, scratch_operands = 0 : i64, tpu.core_type = #tpu.core_type<tc>, window_params = [{transform_indices = @transform_0, window_bounds = array<i64: 8, 32>}, {transform_indices = @transform_1, window_bounds = array<i64: 32, 128>}, {transform_indices = @transform_2, window_bounds = array<i64: 1, 128>}, {transform_indices = @transform_3, window_bounds = array<i64: 8, 128>}]} {
    %c0 = arith.constant 0 : index
    %c0_0 = arith.constant 0 : index
    %0 = vector.load %arg3[%c0, %c0_0] : memref<8x32xf32, #tpu.memory_space<vmem>>, vector<8x32xf32>
    %c0_1 = arith.constant 0 : index
    %c0_2 = arith.constant 0 : index
    %1 = vector.load %arg4[%c0_1, %c0_2] : memref<32x128xf32, #tpu.memory_space<vmem>>, vector<32x128xf32>
    %cst = arith.constant dense<0.000000e+00> : vector<8x128xf32>
    %2 = tpu.matmul %0, %1, %cst {dimension_numbers = #tpu.dot_dimension_numbers<[1], [0], [0], [1], [0, 0, 1, 1], [], []>} : vector<8x32xf32>, vector<32x128xf32>, vector<8x128xf32> -> vector<8x128xf32>
    %c0_3 = arith.constant 0 : index
    %c0_4 = arith.constant 0 : index
    %3 = vector.load %arg5[%c0_3, %c0_4] : memref<1x128xf32, #tpu.memory_space<vmem>>, vector<1x128xf32>
    %4 = vector.broadcast %3 : vector<1x128xf32> to vector<8x128xf32>
    %5 = arith.addf %2, %4 : vector<8x128xf32>
    %cst_5 = arith.constant 0.000000e+00 : f32
    %6 = vector.broadcast %cst_5 : f32 to vector<8x128xf32>
    %7 = arith.maximumf %5, %6 : vector<8x128xf32>
    %c0_6 = arith.constant 0 : index
    %c0_7 = arith.constant 0 : index
    %8 = vector.load %arg6[%c0_6, %c0_7] : memref<8x128xf32, #tpu.memory_space<vmem>>, vector<8x128xf32>
    tpu.vector_store %arg6[%c0_6, %c0_7], %7 {strides = array<i32>} : memref<8x128xf32, #tpu.memory_space<vmem>>, vector<8x128xf32>,
    return
  }
  func.func @transform_0(%arg0: i32, %arg1: i32, %arg2: i32) -> (i32, i32) {
    %c0_i32 = arith.constant 0 : i32
    return %arg0, %arg2 : i32, i32
  }
  func.func @transform_1(%arg0: i32, %arg1: i32, %arg2: i32) -> (i32, i32) {
    %c0_i32 = arith.constant 0 : i32
    return %arg2, %arg1 : i32, i32
  }
  func.func @transform_2(%arg0: i32, %arg1: i32, %arg2: i32) -> (i32, i32) {
    %c0_i32 = arith.constant 0 : i32
    %c0_i32_0 = arith.constant 0 : i32
    return %c0_i32, %arg1 : i32, i32
  }
  func.func @transform_3(%arg0: i32, %arg1: i32, %arg2: i32) -> (i32, i32) {
    %c0_i32 = arith.constant 0 : i32
    return %arg0, %arg1 : i32, i32
  }
}

</mosaic_0001>

<bundles_post_ra>
// kernel: tpu_custom_call.1
= control target key start
LH: loop header
LB: loop body
LE: loop exit
PB: predicated region body
PF: predicated region fallthrough
CT: control target
= control target key end

     0   :  { %8 = vsyncpa [#allocation3], 0  ;;  %s323_s0 = inlined_call_operand.hbm [shape: f32[8,32], index: 0, kind: input, shape index: {}]   ;;  %s324_s1 = inlined_call_operand.hbm [shape: f32[32,128], index: 1, kind: input, shape index: {}]   ;;  %s325_s2 = inlined_call_operand.vmem [shape: f32[1,128], index: 2, kind: input, shape index: {}]   ;;  %s326_s3 = inlined_call_operand.hbm [shape: f32[8,128], index: 3, kind: output, shape index: {}]  }
   0x1   :  { %9 = vsyncpa [#allocation6], 0 }
   0x2   :  { %10 = vsyncpa [#allocation4], 0  ;;  %s249_s12 = smov [#allocation2]   ;;  %s250_s14 = smov [#allocation5]  }
   0x3   :  { %s17_s13 = sshll.u32 %s249_s12, 4  ;;  %s26_s15 = sshll.u32 %s250_s14, 4  ;;  %s18_s13 = int_to_ptr.vmem [resolvable:$true] %s17_s13  ;;  %s277_s15 = int_to_ptr.vmem [resolvable:$true] %s26_s15 }
   0x4   :  { %s177_s18 = scalar_lea.hbm %s323_s0, 128 }
   0x5   :  { %p178_p0 = scmp.ne.s32.totalorder %s323_s0, %s177_s18  ;;  %p181_p1 = scmp.lt.u32.totalorder %s177_s18, %s323_s0 }
   0x7   :  { %p183_p2 = pnand %p181_p1, %p178_p0 }
   0x9   :  { %186 = shalt.err (!%p183_p2)
}
   0xa   :  { %s187_s23 = scalar_lea.vmem %s18_s13, 128  ;;  %p192_p4 = scmp.lt.s32.totalorder %s18_s13, %s18_s13 }
   0xb   :  { %p188_p3 = scmp.ne.s32.totalorder %s18_s13, %s187_s23  ;;  %p193_p5 = scmp.lt.s32.totalorder %s187_s23, %s187_s23 }
   0xd   :  { %p194_p6 = por %p193_p5, %p192_p4 }
   0xf   :  { %p195_p7 = pnand %p194_p6, %p188_p3 }
  0x11   :  { %198 = shalt.err (!%p195_p7)
}
  0x12   :  { %20 = dma.hbm_to_vmem [thread:$0]  %s323_s0, 128, %s18_s13, [#allocation3]  }
  0x13   :  { %s199_s28 = scalar_lea.hbm %s324_s1, 512 }
  0x14   :  { %p200_p8 = scmp.ne.s32.totalorder %s324_s1, %s199_s28  ;;  %p203_p9 = scmp.lt.u32.totalorder %s199_s28, %s324_s1 }
  0x16   :  { %p205_p10 = pnand %p203_p9, %p200_p8 }
  0x18   :  { %208 = shalt.err (!%p205_p10)
}
  0x19   :  { %s209_s6 = scalar_lea.vmem %s277_s15, 512  ;;  %p214_p12 = scmp.lt.s32.totalorder %s277_s15, %s277_s15 }
  0x1a   :  { %p210_p11 = scmp.ne.s32.totalorder %s277_s15, %s209_s6  ;;  %p215_p13 = scmp.lt.s32.totalorder %s209_s6, %s209_s6 }
  0x1c   :  { %p216_p0 = por %p215_p13, %p214_p12 }
  0x1e   :  { %p217_p1 = pnand %p216_p0, %p210_p11 }
  0x20   :  { %220 = shalt.err (!%p217_p1)
}
  0x21   :  { %s251_s0 = smov 128   ;;  %s252_s7 = smov 8  }
  0x22   :  { %32 = dma.hbm_to_vmem [thread:$0]  %s324_s1, 512, %s277_s15, [#allocation6], %s251_s0, %s251_s0, %s252_s7  }
  0x23   :  { %243 = dma.done.wait [#allocation3], 128  }
  0x24   :  { %244 = vsyncadd [#allocation3], 4294967168 }
  0x25   :  { %245 = dma.done.wait [#allocation6], 512  }
  0x26   :  { %246 = vsyncadd [#allocation6], 4294966784  ;;  %v253_v0 = vmov 0.0|0.0   ;;  %vm254_vm0 = vmmov 0   ;;  %v255_v1 = vmov 0.0   ;;  %v42_v2 = vld [vmem:[#allocation5] sm:$0xff] }
  0x27   :  { %163 = vmatprep.subr.bf16.mxu0 %v253_v0  ;;  %160 = vmatprep.mubr.msk.f32.mxu0 %vm254_vm0, %v255_v1  ;;  %v43_v3 = vld [vmem:[#allocation5 + $0x8] sm:$0xff]  ;;  %v44_v4 = vld [vmem:[#allocation5 + $0x10] sm:$0xff]  ;;  %v45_v6 = vld [vmem:[#allocation5 + $0x18] sm:$0xff]  ;;  %vm53_vm1 = vcmask 261120   ;;  %s256_s11 = smov [#allocation7]  }
  0x28   :  { %v164_v5 = vpack.c.bf16 %v43_v3, %v42_v2  ;;  %v167_v7 = vpack.c.bf16 %v45_v6, %v44_v4  ;;  %v41_v8 = vld [vmem:[#allocation2] sm:$0xff]  ;;  %s135_s12 = sshll.u32 %s256_s11, 4  ;;  %s136_s12 = int_to_ptr.vmem [resolvable:$true] %s135_s12 }
  0x29   :  { %v145_v9 = vld [vmem:[%s325_s2] ss:$0 sm:$0xff]  ;;  %s221_s13 = scalar_lea.vmem %s136_s12, 128  ;;  %p226_p3 = scmp.lt.s32.totalorder %s136_s12, %s136_s12 }
  0x2a   :  { %165 = vmatpush3.bf16.msra.mxu0 %v164_v5  ;;  %p222_p2 = scmp.ne.s32.totalorder %s136_s12, %s221_s13  ;;  %p227_p4 = scmp.lt.s32.totalorder %s221_s13, %s221_s13 }
  0x2b   :  { %166 = vmatprep.subr.bf16.mxu0 %v253_v0 }
  0x2c   :  { %p228_p5 = por %p227_p4, %p226_p3 }
  0x2e   :  { %168 = vmatpush3.bf16.msra.mxu0 %v167_v7  ;;  %p229_p6 = pnand %p228_p5, %p222_p2 }
  0x31   :  { %161 = vmatmul.mubr.msk.f32.vlgmr.msra.gmra.mrb[0].mxu0 %vm53_vm1, %v41_v8 }
 0x104   :  { %v123_v10 = vpop.f32.mrb[0].mxu0 }
 0x105   :  { %v124_v11 = vadd.f32 %v145_v9, %v123_v10  ;;  %v162_v12 = vpop.f32.mrb[1].mxu0 }
 0x107   :  { %v127_v13 = vmax.f32 %v124_v11, 0.0 }
 0x109   :  { %128 = vst [vmem:[#allocation7] sm:$0xff] %v127_v13 }
 0x10a   :  { %232 = shalt.err (!%p229_p6)
}
 0x10b   :  { %s233_s16 = scalar_lea.hbm %s326_s3, 128 }
 0x10c   :  { %p234_p7 = scmp.ne.s32.totalorder %s326_s3, %s233_s16  ;;  %p237_p8 = scmp.lt.u32.totalorder %s233_s16, %s326_s3 }
 0x10e   :  { %p239_p9 = pnand %p237_p8, %p234_p7 }
 0x110   :  { %242 = shalt.err (!%p239_p9)
}
 0x111   :  { %138 = dma.vmem_to_hbm [thread:$0]  %s136_s12, 128, %s326_s3, [#allocation4]  }
 0x112   :  { %247 = dma.done.wait [#allocation4], 128  }
 0x113   :  { %248 = vsyncadd [#allocation4], 4294967168 }
 0x114   :  { %142 = vsyncpa [#allocation3], 1 }
 0x115   :  { %143 = vsyncpa [#allocation6], 1 }
 0x116   :  { %144 = vsyncpa [#allocation4], 1 }

</bundles_post_ra>
